<compile_context>
chip_gen: v6e
topology: v6e:2x2x1
jax: 0.10.0
libtpu: 0.0.40
codegen_flags: <defaults>
</compile_context>

<pallas_src>
import functools

import numpy as np
import jax
import jax.numpy as jnp
from jax.experimental import pallas as pl
from jax.experimental.pallas import tpu as pltpu


# ----------------------------------------------------------------------------
# Cell ("base") anchor construction — mirrors the torch module's
# generate_anchors exactly: aspect-ratio-major / scale-minor, angle outermost.
# (Note: this matches the provided spec, which differs from detectron2's
#  size-major / angle-innermost ordering.)
# ----------------------------------------------------------------------------
def generate_cell_anchors(scales, aspect_ratios, angles, dtype=jnp.float32):
    scales_t = jnp.asarray(scales, dtype)
    ars_t = jnp.asarray(aspect_ratios, dtype)
    angles_t = jnp.asarray(angles, dtype)
    sqrt_ar = jnp.sqrt(ars_t)
    widths = (1.0 / sqrt_ar[:, None] * scales_t).reshape(-1)     # ar-major, scale-minor
    heights = (sqrt_ar[:, None] * scales_t).reshape(-1)
    n = widths.shape[0]
    zeros = jnp.zeros((n,), dtype)
    anchors = jnp.stack([zeros, zeros, widths, heights], axis=1)  # (n, 4)
    anchors_rep = jnp.tile(anchors, (angles_t.shape[0], 1))       # angle outermost
    angles_rep = jnp.repeat(angles_t, n)[:, None]
    return jnp.concatenate([anchors_rep, angles_rep], axis=1)     # (A, 5)


# ----------------------------------------------------------------------------
# Pallas kernel: one grid step emits a (TILE_Y, CHUNK, 5) block of the final
# AoS anchor tensor for one feature level.
# ----------------------------------------------------------------------------
def _anchor_tile_kernel(slab_ref, yshift_ref, out_ref):
    # slab_ref:   (CHUNK, 5)      f32  anchors of grid row y==0 for this chunk
    # yshift_ref: (TILE_Y, 1, 5)  f32  [0, y*stride_h, 0, 0, 0] per tile row
    # out_ref:    (TILE_Y, CHUNK, 5) out_dtype — final layout, stored once.
    out_ref[...] = (slab_ref[...][None, :, :] + yshift_ref[...]).astype(out_ref.dtype)


@functools.partial(
    jax.jit,
    static_argnames=("grid_h", "grid_w", "stride_h", "stride_w",
                     "out_dtype", "rows_per_block", "chunk_max"),
)
def grid_anchors_pallas(base_anchors, *, grid_h, grid_w, stride_h, stride_w,
                        out_dtype=jnp.float32, rows_per_block=0, chunk_max=4096):
    """Returns (grid_h * grid_w * A, 5) rotated anchors for one feature map."""
    out_dtype = jnp.dtype(out_dtype)
    A = int(base_anchors.shape[0])
    WA = grid_w * A

    # --- tiny per-level tables (plain XLA, O(W*A + H) elements) -------------
    base = jnp.asarray(base_anchors, jnp.float32)                       # (A, 5)
    xs = jnp.arange(grid_w, dtype=jnp.float32) * float(stride_w)        # (W,)
    slab = jnp.tile(base, (grid_w, 1))                                  # (W*A, 5)
    slab = slab.at[:, 0].add(jnp.repeat(xs, A))                         # cx += x*stride_w
    ys = jnp.arange(grid_h, dtype=jnp.float32) * float(stride_h)        # (H,)
    yshift = jnp.zeros((grid_h, 1, 5), jnp.float32).at[:, 0, 1].set(ys)  # cy column only

    # --- tile selection (dtype-aware) ---------------------------------------
    # One output row occupies a 128-lane-padded vreg row in VMEM, so budget by
    # padded bytes. ~4 MiB per out block; out(x2) + f32 slab chunk(x2) stays
    # under the v5e 16 MiB scoped-VMEM default (v6e/v7x have more headroom).
    itemsize = out_dtype.itemsize
    if rows_per_block <= 0:
        rows_per_block = max(256, (4 << 20) // (128 * itemsize))
    if WA <= chunk_max:
        chunk = WA                                  # full extent: no /8 constraint
    else:
        chunk = max(16, (chunk_max // 16) * 16)     # mult of 16 (bf16 sublane packing)
    tile_y = max(1, min(grid_h, rows_per_block // max(chunk, 1)))

    n_chunks = pl.cdiv(WA, chunk)
    n_ytiles = pl.cdiv(grid_h, tile_y)

    # Grid order: chunk index outer, y-tile inner, so each slab chunk is DMA'd
    # into VMEM exactly once and reused across the whole column sweep.
    out3 = pl.pallas_call(
        _anchor_tile_kernel,
        out_shape=jax.ShapeDtypeStruct((grid_h, WA, 5), out_dtype),
        grid=(n_chunks, n_ytiles),
        in_specs=[
            pl.BlockSpec((chunk, 5), lambda j, i: (j, 0)),          # slab chunk
            pl.BlockSpec((tile_y, 1, 5), lambda j, i: (i, 0, 0)),   # y shift tile
        ],
        out_specs=pl.BlockSpec((tile_y, chunk, 5), lambda j, i: (i, j, 0)),
        # "parallel" on both axes: every block is independent. On v7x,
        # pltpu.CORE_PARALLEL on the y-tile axis can additionally shard the
        # output DMAs across the two TensorCores.
        compiler_params=pltpu.CompilerParams(
            dimension_semantics=("parallel", "parallel")),
    )(slab, yshift)

    # (H, W*A, 5) -> (H*W*A, 5): a pure bitcast when (W*A) % 8 == 0 (the common
    # case, e.g. 8 angles); otherwise XLA inserts a single copy.
    return out3.reshape(grid_h * WA, 5)


# ----------------------------------------------------------------------------
# Module equivalent.
# ----------------------------------------------------------------------------
class RotatedAnchorGeneratorPallas:
    def __init__(
        self,
        sizes=((128, 256, 512),),
        aspect_ratios=((0.5, 1.0, 2.0),),
        angles=((0, 45, 90, 135, 180, 225, 270, 315),),
    ):
        if not isinstance(sizes[0], (list, tuple)):
            sizes = tuple((s,) for s in sizes)
        if not isinstance(aspect_ratios[0], (list, tuple)):
            aspect_ratios = (aspect_ratios,) * len(sizes)
        self.sizes = sizes
        self.aspect_ratios = aspect_ratios
        self.angles = angles
        self.cell_anchors = [
            generate_cell_anchors(s, a, t)
            for s, a, t in zip(sizes, aspect_ratios, angles)
        ]

    def num_anchors_per_location(self):
        return [len(s) * len(a) * len(t)
                for s, a, t in zip(self.sizes, self.aspect_ratios, self.angles)]

    def __call__(self, image_tensors, image_sizes, feature_maps):
        grid_sizes = [tuple(int(s) for s in fm.shape[-2:]) for fm in feature_maps]
        image_size = image_tensors.shape[-2:]
        # torch: anchors are cast to the feature-map dtype (int shifts + casted base).
        out_dtype = jnp.dtype(feature_maps[0].dtype)

        anchors_over_all_feature_maps = []
        for (gh, gw), base in zip(grid_sizes, self.cell_anchors):
            stride_h = int(image_size[0]) // gh
            stride_w = int(image_size[1]) // gw
            anchors_over_all_feature_maps.append(
                grid_anchors_pallas(base, grid_h=gh, grid_w=gw,
                                    stride_h=stride_h, stride_w=stride_w,
                                    out_dtype=out_dtype)
            )

        if len(anchors_over_all_feature_maps) == 1:
            per_image = anchors_over_all_feature_maps[0]
        else:
            # TODO(synk): eliminate this cross-level concatenate by having each
            # level's kernel write straight into one preallocated (sum N_l, 5)
            # buffer (input_output_aliases + manual DMA at per-level row
            # offsets); kept as a plain concat here for robustness.
            per_image = jnp.concatenate(anchors_over_all_feature_maps, axis=0)

        # anchors are identical for every image in the batch (same as torch ref)
        return [per_image for _ in range(len(image_sizes))]


# ----------------------------------------------------------------------------
# Pure-numpy mirror of the torch semantics, for validation.
# ----------------------------------------------------------------------------
def _ref_cell_anchors(scales, ars, angles):
    out = []
    for ang in angles:              # angle outermost (torch .repeat tiles the block)
        for ar in ars:              # aspect-ratio major
            for s in scales:        # scale minor
                w = s / np.sqrt(ar)
                h = s * np.sqrt(ar)
                out.append([0.0, 0.0, w, h, ang])
    return np.asarray(out, np.float32)


def _ref_grid_anchors(base, gh, gw, sh, sw):
    base = np.asarray(base, np.float32)
    xs = np.arange(gw, dtype=np.float32) * sw
    ys = np.arange(gh, dtype=np.float32) * sh
    yy, xx = np.meshgrid(ys, xs, indexing="ij")
    z = np.zeros(gh * gw, np.float32)
    shifts = np.stack([xx.reshape(-1), yy.reshape(-1), z, z, z], axis=1)
    return (shifts[:, None, :] + base[None, :, :]).reshape(-1, 5)


if __name__ == "__main__":
    key = jax.random.PRNGKey(0)
    k_img, k_f1, k_f2 = jax.random.split(key, 3)

    # Small deterministic inputs: batch=2, channels=4, image 64x64,
    # two feature maps at 16x16 and 8x8 (strides 4 and 8).
    N, C = 2, 4
    image_h = image_w = 64
    image_tensors = jax.random.normal(k_img, (N, 3, image_h, image_w), jnp.float32)
    image_sizes = [(image_h, image_w)] * N
    fm1 = jax.random.normal(k_f1, (N, C, 16, 16), jnp.float32)
    fm2 = jax.random.normal(k_f2, (N, C, 8, 8), jnp.float32)

    sizes = ((32, 64), (128,))
    ars = ((0.5, 1.0), (1.0,))
    angles = ((0.0, 90.0), (0.0, 45.0, 90.0, 135.0))
    gen = RotatedAnchorGeneratorPallas(sizes=sizes, aspect_ratios=ars, angles=angles)

    anchors = gen(image_tensors, image_sizes, [fm1, fm2])
    anchors = [jax.block_until_ready(a) for a in anchors]

    # End-to-end check against an independent numpy mirror of the torch spec
    # (including cell-anchor ordering: angle-outer, ar-major, scale-minor).
    ref = np.concatenate(
        [
            _ref_grid_anchors(_ref_cell_anchors(sizes[0], ars[0], angles[0]), 16, 16, 4, 4),
            _ref_grid_anchors(_ref_cell_anchors(sizes[1], ars[1], angles[1]), 8, 8, 8, 8),
        ],
        axis=0,
    )
    assert len(anchors) == N
    for a in anchors:
        assert a.shape == ref.shape and a.dtype == jnp.float32
        np.testing.assert_allclose(np.asarray(a), ref, rtol=1e-6, atol=1e-4)

    base0 = gen.cell_anchors[0]          # A = 8
    ref_base0 = _ref_cell_anchors(sizes[0], ars[0], angles[0])
    np.testing.assert_allclose(np.asarray(base0), ref_base0, rtol=1e-6, atol=1e-5)

    # Multi-block path with tiles that divide the level exactly.
    out_div = grid_anchors_pallas(base0, grid_h=16, grid_w=16, stride_h=4, stride_w=4,
                                  out_dtype=jnp.float32,
                                  rows_per_block=512, chunk_max=64)
    out_div = jax.block_until_ready(out_div)
    np.testing.assert_allclose(np.asarray(out_div),
                               _ref_grid_anchors(ref_base0, 16, 16, 4, 4),
                               rtol=1e-6, atol=1e-4)

    # Multi-block path with NON-dividing tiles (exercises masked edge blocks).
    out_nd = grid_anchors_pallas(base0, grid_h=10, grid_w=9, stride_h=6, stride_w=7,
                                 out_dtype=jnp.float32,
                                 rows_per_block=192, chunk_max=48)
    out_nd = jax.block_until_ready(out_nd)
    np.testing.assert_allclose(np.asarray(out_nd),
                               _ref_grid_anchors(ref_base0, 10, 9, 6, 7),
                               rtol=1e-6, atol=1e-4)

    # bf16 output path (torch casts anchors to the feature dtype); loose
    # tolerance for bf16 rounding of centers/sizes.
    out_bf = grid_anchors_pallas(base0, grid_h=16, grid_w=16, stride_h=4, stride_w=4,
                                 out_dtype=jnp.bfloat16)
    out_bf = jax.block_until_ready(out_bf)
    np.testing.assert_allclose(np.asarray(out_bf).astype(np.float32),
                               _ref_grid_anchors(ref_base0, 16, 16, 4, 4),
                               rtol=2e-2, atol=0.5)

    print("KERNEL_OK")
</pallas_src>

<mosaic_0001>
module attributes {stable_mosaic.version = 11 : i64} {
  func.func @_anchor_tile_kernel(%arg0: i32, %arg1: i32, %arg2: memref<128x5xf32, #tpu.memory_space<vmem>>, %arg3: memref<16x1x5xf32, #tpu.memory_space<vmem>>, %arg4: memref<16x128x5xf32, #tpu.memory_space<vmem>>) attributes {dimension_semantics = [#tpu.dimension_semantics<parallel>, #tpu.dimension_semantics<parallel>], iteration_bounds = array<i64: 1, 1>, scalar_prefetch = 0 : i64, scratch_operands = 0 : i64, tpu.core_type = #tpu.core_type<tc>, window_params = [{transform_indices = @transform_0, window_bounds = array<i64: 128, 5>}, {transform_indices = @transform_1, window_bounds = array<i64: 16, 1, 5>}, {transform_indices = @transform_2, window_bounds = array<i64: 16, 128, 5>}]} {
    %c0 = arith.constant 0 : index
    %c0_0 = arith.constant 0 : index
    %0 = vector.load %arg2[%c0, %c0_0] : memref<128x5xf32, #tpu.memory_space<vmem>>, vector<128x5xf32>
    %1 = vector.shape_cast %0 : vector<128x5xf32> to vector<1x128x5xf32>
    %c0_1 = arith.constant 0 : index
    %c0_2 = arith.constant 0 : index
    %c0_3 = arith.constant 0 : index
    %2 = vector.load %arg3[%c0_1, %c0_2, %c0_3] : memref<16x1x5xf32, #tpu.memory_space<vmem>>, vector<16x1x5xf32>
    %3 = vector.broadcast %1 : vector<1x128x5xf32> to vector<16x128x5xf32>
    %4 = vector.broadcast %2 : vector<16x1x5xf32> to vector<16x128x5xf32>
    %5 = arith.addf %3, %4 : vector<16x128x5xf32>
    %c0_4 = arith.constant 0 : index
    %c0_5 = arith.constant 0 : index
    %c0_6 = arith.constant 0 : index
    %6 = vector.load %arg4[%c0_4, %c0_5, %c0_6] : memref<16x128x5xf32, #tpu.memory_space<vmem>>, vector<16x128x5xf32>
    tpu.vector_store %arg4[%c0_4, %c0_5, %c0_6], %5 {strides = array<i32>} : memref<16x128x5xf32, #tpu.memory_space<vmem>>, vector<16x128x5xf32>,
    return
  }
  func.func @transform_0(%arg0: i32, %arg1: i32) -> (i32, i32) {
    %c0_i32 = arith.constant 0 : i32
    %c0_i32_0 = arith.constant 0 : i32
    return %arg0, %c0_i32 : i32, i32
  }
  func.func @transform_1(%arg0: i32, %arg1: i32) -> (i32, i32, i32) {
    %c0_i32 = arith.constant 0 : i32
    %c0_i32_0 = arith.constant 0 : i32
    %c0_i32_1 = arith.constant 0 : i32
    return %arg1, %c0_i32, %c0_i32_0 : i32, i32, i32
  }
  func.func @transform_2(%arg0: i32, %arg1: i32) -> (i32, i32, i32) {
    %c0_i32 = arith.constant 0 : i32
    %c0_i32_0 = arith.constant 0 : i32
    return %arg1, %arg0, %c0_i32 : i32, i32, i32
  }
}

</mosaic_0001>

<bundles_post_ra>
// kernel: grid_anchors_pallas.1
= control target key start
LH: loop header
LB: loop body
LE: loop exit
PB: predicated region body
PF: predicated region fallthrough
CT: control target
= control target key end

     0   :  { %vm395_vm0 = vcmask 39936   ;;  %s2095_s0 = inlined_call_operand.vmem [shape: f32[128,5], index: 0, kind: input, shape index: {}]   ;;  %s2096_s1 = inlined_call_operand.vmem [shape: f32[16,1,5], index: 1, kind: input, shape index: {}]   ;;  %s2097_s2 = inlined_call_operand.vmem [shape: f32[16,128,5], index: 2, kind: output, shape index: {}]  }
   0x1   :  { %v690_v0 = vld [vmem:[%s2095_s0] sm:$0xff]  ;;  %v698_v2 = vld [vmem:[%s2095_s0 + $0x8] sm:$0xff]  ;;  %v705_v5 = vld [vmem:[%s2095_s0 + $0x10] sm:$0xff] }
   0x2   :  { %v656_v1 = vld [vmem:[%s2096_s1] ss:$0 sm:$0xff]  ;;  %v710_v6 = vld [vmem:[%s2095_s0 + $0x18] sm:$0xff]  ;;  %v723_v11 = vld [vmem:[%s2095_s0 + $0x28] sm:$0xff] }
   0x3   :  { %v139_v3 = vadd.f32 %v656_v1, %v690_v0  ;;  %v140_v4 = vadd.f32 %v656_v1, %v698_v2  ;;  %v715_v7 = vld [vmem:[%s2095_s0 + $0x20] sm:$0xff]  ;;  %v141_v8 = vadd.f32 %v656_v1, %v705_v5  ;;  %v142_v9 = vadd.f32 %v656_v1, %v710_v6  ;;  %v728_v12 = vld [vmem:[%s2095_s0 + $0x30] sm:$0xff]  ;;  %v733_v13 = vld [vmem:[%s2095_s0 + $0x38] sm:$0xff] }
   0x4   :  { %v143_v10 = vadd.f32 %v656_v1, %v715_v7  ;;  %v144_v14 = vadd.f32 %v656_v1, %v723_v11  ;;  %v145_v15 = vadd.f32 %v656_v1, %v728_v12  ;;  %v146_v16 = vadd.f32 %v656_v1, %v733_v13  ;;  %v749_v17 = vld [vmem:[%s2095_s0 + $0x40] sm:$0xff]  ;;  %v754_v18 = vld [vmem:[%s2095_s0 + $0x48] sm:$0xff]  ;;  %v759_v19 = vld [vmem:[%s2095_s0 + $0x50] sm:$0xff] }
   0x5   :  { %396 = vst.msk [vmem:[%s2097_s2] sm:$0xff] %vm395_vm0, %v139_v3  ;;  %397 = vst.msk [vmem:[%s2097_s2 + $0x8] sm:$0xff] %vm395_vm0, %v140_v4  ;;  %v147_v20 = vadd.f32 %v656_v1, %v749_v17  ;;  %v148_v21 = vadd.f32 %v656_v1, %v754_v18  ;;  %v149_v22 = vadd.f32 %v656_v1, %v759_v19  ;;  %v779_v23 = vld [vmem:[%s2095_s0 + $0x58] sm:$0xff]  ;;  %v784_v24 = vld [vmem:[%s2095_s0 + $0x60] sm:$0xff] }
   0x6   :  { %398 = vst.msk [vmem:[%s2097_s2 + $0x10] sm:$0xff] %vm395_vm0, %v141_v8  ;;  %399 = vst.msk [vmem:[%s2097_s2 + $0x18] sm:$0xff] %vm395_vm0, %v142_v9  ;;  %v789_v25 = vld [vmem:[%s2095_s0 + $0x68] sm:$0xff]  ;;  %v150_v26 = vadd.f32 %v656_v1, %v779_v23  ;;  %v151_v27 = vadd.f32 %v656_v1, %v784_v24  ;;  %v809_v29 = vld [vmem:[%s2095_s0 + $0x70] sm:$0xff] }
   0x7   :  { %400 = vst.msk [vmem:[%s2097_s2 + $0x20] sm:$0xff] %vm395_vm0, %v143_v10  ;;  %401 = vst.msk [vmem:[%s2097_s2 + $0x28] sm:$0xff] %vm395_vm0, %v144_v14  ;;  %v152_v28 = vadd.f32 %v656_v1, %v789_v25  ;;  %v814_v30 = vld [vmem:[%s2095_s0 + $0x78] sm:$0xff]  ;;  %v657_v31 = vld [vmem:[%s2096_s1 + $0x1] ss:$0 sm:$0xff]  ;;  %v153_v32 = vadd.f32 %v656_v1, %v809_v29 }
   0x8   :  { %402 = vst.msk [vmem:[%s2097_s2 + $0x30] sm:$0xff] %vm395_vm0, %v145_v15  ;;  %403 = vst.msk [vmem:[%s2097_s2 + $0x38] sm:$0xff] %vm395_vm0, %v146_v16  ;;  %v154_v33 = vadd.f32 %v656_v1, %v814_v30  ;;  %v155_v34 = vadd.f32 %v657_v31, %v690_v0  ;;  %v156_v35 = vadd.f32 %v657_v31, %v698_v2  ;;  %v658_v40 = vld [vmem:[%s2096_s1 + $0x2] ss:$0 sm:$0xff]  ;;  %v659_v57 = vld [vmem:[%s2096_s1 + $0x3] ss:$0 sm:$0xff] }
   0x9   :  { %404 = vst.msk [vmem:[%s2097_s2 + $0x40] sm:$0xff] %vm395_vm0, %v147_v20  ;;  %405 = vst.msk [vmem:[%s2097_s2 + $0x48] sm:$0xff] %vm395_vm0, %v148_v21  ;;  %v157_v36 = vadd.f32 %v657_v31, %v705_v5  ;;  %v158_v37 = vadd.f32 %v657_v31, %v710_v6  ;;  %v159_v38 = vadd.f32 %v657_v31, %v715_v7  ;;  %v660_v21 = vld [vmem:[%s2096_s1 + $0x4] ss:$0 sm:$0xff] }
   0xa   :  { %406 = vst.msk [vmem:[%s2097_s2 + $0x50] sm:$0xff] %vm395_vm0, %v149_v22  ;;  %407 = vst.msk [vmem:[%s2097_s2 + $0x58] sm:$0xff] %vm395_vm0, %v150_v26  ;;  %v160_v39 = vadd.f32 %v657_v31, %v723_v11  ;;  %v161_v41 = vadd.f32 %v657_v31, %v728_v12  ;;  %v162_v42 = vadd.f32 %v657_v31, %v733_v13 }
   0xb   :  { %408 = vst.msk [vmem:[%s2097_s2 + $0x60] sm:$0xff] %vm395_vm0, %v151_v27  ;;  %409 = vst.msk [vmem:[%s2097_s2 + $0x68] sm:$0xff] %vm395_vm0, %v152_v28  ;;  %v163_v43 = vadd.f32 %v657_v31, %v749_v17  ;;  %v164_v44 = vadd.f32 %v657_v31, %v754_v18  ;;  %v165_v45 = vadd.f32 %v657_v31, %v759_v19 }
   0xc   :  { %410 = vst.msk [vmem:[%s2097_s2 + $0x70] sm:$0xff] %vm395_vm0, %v153_v32  ;;  %411 = vst.msk [vmem:[%s2097_s2 + $0x78] sm:$0xff] %vm395_vm0, %v154_v33  ;;  %v166_v46 = vadd.f32 %v657_v31, %v779_v23  ;;  %v167_v47 = vadd.f32 %v657_v31, %v784_v24  ;;  %v168_v48 = vadd.f32 %v657_v31, %v789_v25 }
   0xd   :  { %412 = vst.msk [vmem:[%s2097_s2 + $0x80] sm:$0xff] %vm395_vm0, %v155_v34  ;;  %413 = vst.msk [vmem:[%s2097_s2 + $0x88] sm:$0xff] %vm395_vm0, %v156_v35  ;;  %v169_v49 = vadd.f32 %v657_v31, %v809_v29  ;;  %v170_v50 = vadd.f32 %v657_v31, %v814_v30  ;;  %v171_v51 = vadd.f32 %v658_v40, %v690_v0 }
   0xe   :  { %414 = vst.msk [vmem:[%s2097_s2 + $0x90] sm:$0xff] %vm395_vm0, %v157_v36  ;;  %415 = vst.msk [vmem:[%s2097_s2 + $0x98] sm:$0xff] %vm395_vm0, %v158_v37  ;;  %v172_v52 = vadd.f32 %v658_v40, %v698_v2  ;;  %v173_v53 = vadd.f32 %v658_v40, %v705_v5  ;;  %v174_v54 = vadd.f32 %v658_v40, %v710_v6 }
   0xf   :  { %416 = vst.msk [vmem:[%s2097_s2 + $0xa0] sm:$0xff] %vm395_vm0, %v159_v38  ;;  %417 = vst.msk [vmem:[%s2097_s2 + $0xa8] sm:$0xff] %vm395_vm0, %v160_v39  ;;  %v175_v55 = vadd.f32 %v658_v40, %v715_v7  ;;  %v176_v56 = vadd.f32 %v658_v40, %v723_v11  ;;  %v177_v58 = vadd.f32 %v658_v40, %v728_v12 }
  0x10   :  { %418 = vst.msk [vmem:[%s2097_s2 + $0xb0] sm:$0xff] %vm395_vm0, %v161_v41  ;;  %419 = vst.msk [vmem:[%s2097_s2 + $0xb8] sm:$0xff] %vm395_vm0, %v162_v42  ;;  %v178_v59 = vadd.f32 %v658_v40, %v733_v13  ;;  %v179_v60 = vadd.f32 %v658_v40, %v749_v17  ;;  %v180_v61 = vadd.f32 %v658_v40, %v754_v18 }
  0x11   :  { %420 = vst.msk [vmem:[%s2097_s2 + $0xc0] sm:$0xff] %vm395_vm0, %v163_v43  ;;  %421 = vst.msk [vmem:[%s2097_s2 + $0xc8] sm:$0xff] %vm395_vm0, %v164_v44  ;;  %v181_v62 = vadd.f32 %v658_v40, %v759_v19  ;;  %v182_v63 = vadd.f32 %v658_v40, %v779_v23  ;;  %v183_v1 = vadd.f32 %v658_v40, %v784_v24  ;;  %v661_v43 = vld [vmem:[%s2096_s1 + $0x5] ss:$0 sm:$0xff] }
  0x12   :  { %422 = vst.msk [vmem:[%s2097_s2 + $0xd0] sm:$0xff] %vm395_vm0, %v165_v45  ;;  %423 = vst.msk [vmem:[%s2097_s2 + $0xd8] sm:$0xff] %vm395_vm0, %v166_v46  ;;  %v184_v3 = vadd.f32 %v658_v40, %v789_v25  ;;  %v185_v4 = vadd.f32 %v658_v40, %v809_v29  ;;  %v186_v8 = vadd.f32 %v658_v40, %v814_v30 }
  0x13   :  { %424 = vst.msk [vmem:[%s2097_s2 + $0xe0] sm:$0xff] %vm395_vm0, %v167_v47  ;;  %425 = vst.msk [vmem:[%s2097_s2 + $0xe8] sm:$0xff] %vm395_vm0, %v168_v48  ;;  %v187_v9 = vadd.f32 %v659_v57, %v690_v0  ;;  %v188_v10 = vadd.f32 %v659_v57, %v698_v2  ;;  %v189_v14 = vadd.f32 %v659_v57, %v705_v5 }
  0x14   :  { %426 = vst.msk [vmem:[%s2097_s2 + $0xf0] sm:$0xff] %vm395_vm0, %v169_v49  ;;  %427 = vst.msk [vmem:[%s2097_s2 + $0xf8] sm:$0xff] %vm395_vm0, %v170_v50  ;;  %v190_v15 = vadd.f32 %v659_v57, %v710_v6  ;;  %v191_v16 = vadd.f32 %v659_v57, %v715_v7  ;;  %v192_v20 = vadd.f32 %v659_v57, %v723_v11 }
  0x15   :  { %428 = vst.msk [vmem:[%s2097_s2 + $0x100] sm:$0xff] %vm395_vm0, %v171_v51  ;;  %429 = vst.msk [vmem:[%s2097_s2 + $0x108] sm:$0xff] %vm395_vm0, %v172_v52  ;;  %v193_v22 = vadd.f32 %v659_v57, %v728_v12  ;;  %v194_v26 = vadd.f32 %v659_v57, %v733_v13  ;;  %v195_v27 = vadd.f32 %v659_v57, %v749_v17 }
  0x16   :  { %430 = vst.msk [vmem:[%s2097_s2 + $0x110] sm:$0xff] %vm395_vm0, %v173_v53  ;;  %431 = vst.msk [vmem:[%s2097_s2 + $0x118] sm:$0xff] %vm395_vm0, %v174_v54  ;;  %v196_v28 = vadd.f32 %v659_v57, %v754_v18  ;;  %v197_v31 = vadd.f32 %v659_v57, %v759_v19  ;;  %v198_v32 = vadd.f32 %v659_v57, %v779_v23 }
  0x17   :  { %432 = vst.msk [vmem:[%s2097_s2 + $0x120] sm:$0xff] %vm395_vm0, %v175_v55  ;;  %433 = vst.msk [vmem:[%s2097_s2 + $0x128] sm:$0xff] %vm395_vm0, %v176_v56  ;;  %v199_v33 = vadd.f32 %v659_v57, %v784_v24  ;;  %v200_v34 = vadd.f32 %v659_v57, %v789_v25  ;;  %v201_v35 = vadd.f32 %v659_v57, %v809_v29 }
  0x18   :  { %434 = vst.msk [vmem:[%s2097_s2 + $0x130] sm:$0xff] %vm395_vm0, %v177_v58  ;;  %435 = vst.msk [vmem:[%s2097_s2 + $0x138] sm:$0xff] %vm395_vm0, %v178_v59  ;;  %v202_v36 = vadd.f32 %v659_v57, %v814_v30  ;;  %v203_v37 = vadd.f32 %v660_v21, %v690_v0  ;;  %v204_v38 = vadd.f32 %v660_v21, %v698_v2 }
  0x19   :  { %436 = vst.msk [vmem:[%s2097_s2 + $0x140] sm:$0xff] %vm395_vm0, %v179_v60  ;;  %437 = vst.msk [vmem:[%s2097_s2 + $0x148] sm:$0xff] %vm395_vm0, %v180_v61  ;;  %v205_v39 = vadd.f32 %v660_v21, %v705_v5  ;;  %v206_v40 = vadd.f32 %v660_v21, %v710_v6  ;;  %v207_v41 = vadd.f32 %v660_v21, %v715_v7  ;;  %v662_v60 = vld [vmem:[%s2096_s1 + $0x6] ss:$0 sm:$0xff] }
  0x1a   :  { %438 = vst.msk [vmem:[%s2097_s2 + $0x150] sm:$0xff] %vm395_vm0, %v181_v62  ;;  %439 = vst.msk [vmem:[%s2097_s2 + $0x158] sm:$0xff] %vm395_vm0, %v182_v63  ;;  %v208_v42 = vadd.f32 %v660_v21, %v723_v11  ;;  %v209_v44 = vadd.f32 %v660_v21, %v728_v12  ;;  %v210_v45 = vadd.f32 %v660_v21, %v733_v13 }
  0x1b   :  { %440 = vst.msk [vmem:[%s2097_s2 + $0x160] sm:$0xff] %vm395_vm0, %v183_v1  ;;  %441 = vst.msk [vmem:[%s2097_s2 + $0x168] sm:$0xff] %vm395_vm0, %v184_v3  ;;  %v211_v46 = vadd.f32 %v660_v21, %v749_v17  ;;  %v212_v47 = vadd.f32 %v660_v21, %v754_v18  ;;  %v213_v48 = vadd.f32 %v660_v21, %v759_v19 }
  0x1c   :  { %442 = vst.msk [vmem:[%s2097_s2 + $0x170] sm:$0xff] %vm395_vm0, %v185_v4  ;;  %443 = vst.msk [vmem:[%s2097_s2 + $0x178] sm:$0xff] %vm395_vm0, %v186_v8  ;;  %v214_v49 = vadd.f32 %v660_v21, %v779_v23  ;;  %v215_v50 = vadd.f32 %v660_v21, %v784_v24  ;;  %v216_v51 = vadd.f32 %v660_v21, %v789_v25 }
  0x1d   :  { %444 = vst.msk [vmem:[%s2097_s2 + $0x180] sm:$0xff] %vm395_vm0, %v187_v9  ;;  %445 = vst.msk [vmem:[%s2097_s2 + $0x188] sm:$0xff] %vm395_vm0, %v188_v10  ;;  %v217_v52 = vadd.f32 %v660_v21, %v809_v29  ;;  %v218_v53 = vadd.f32 %v660_v21, %v814_v30  ;;  %v219_v54 = vadd.f32 %v661_v43, %v690_v0 }
  0x1e   :  { %446 = vst.msk [vmem:[%s2097_s2 + $0x190] sm:$0xff] %vm395_vm0, %v189_v14  ;;  %447 = vst.msk [vmem:[%s2097_s2 + $0x198] sm:$0xff] %vm395_vm0, %v190_v15  ;;  %v220_v55 = vadd.f32 %v661_v43, %v698_v2  ;;  %v221_v56 = vadd.f32 %v661_v43, %v705_v5  ;;  %v222_v57 = vadd.f32 %v661_v43, %v710_v6 }
  0x1f   :  { %448 = vst.msk [vmem:[%s2097_s2 + $0x1a0] sm:$0xff] %vm395_vm0, %v191_v16  ;;  %449 = vst.msk [vmem:[%s2097_s2 + $0x1a8] sm:$0xff] %vm395_vm0, %v192_v20  ;;  %v223_v58 = vadd.f32 %v661_v43, %v715_v7  ;;  %v224_v59 = vadd.f32 %v661_v43, %v723_v11  ;;  %v225_v61 = vadd.f32 %v661_v43, %v728_v12 }
  0x20   :  { %450 = vst.msk [vmem:[%s2097_s2 + $0x1b0] sm:$0xff] %vm395_vm0, %v193_v22  ;;  %451 = vst.msk [vmem:[%s2097_s2 + $0x1b8] sm:$0xff] %vm395_vm0, %v194_v26  ;;  %v226_v62 = vadd.f32 %v661_v43, %v733_v13  ;;  %v227_v63 = vadd.f32 %v661_v43, %v749_v17  ;;  %v228_v1 = vadd.f32 %v661_v43, %v754_v18 }
  0x21   :  { %452 = vst.msk [vmem:[%s2097_s2 + $0x1c0] sm:$0xff] %vm395_vm0, %v195_v27  ;;  %453 = vst.msk [vmem:[%s2097_s2 + $0x1c8] sm:$0xff] %vm395_vm0, %v196_v28  ;;  %v229_v3 = vadd.f32 %v661_v43, %v759_v19  ;;  %v230_v4 = vadd.f32 %v661_v43, %v779_v23  ;;  %v231_v8 = vadd.f32 %v661_v43, %v784_v24  ;;  %v663_v27 = vld [vmem:[%s2096_s1 + $0x7] ss:$0 sm:$0xff] }
  0x22   :  { %454 = vst.msk [vmem:[%s2097_s2 + $0x1d0] sm:$0xff] %vm395_vm0, %v197_v31  ;;  %455 = vst.msk [vmem:[%s2097_s2 + $0x1d8] sm:$0xff] %vm395_vm0, %v198_v32  ;;  %v232_v9 = vadd.f32 %v661_v43, %v789_v25  ;;  %v233_v10 = vadd.f32 %v661_v43, %v809_v29  ;;  %v234_v14 = vadd.f32 %v661_v43, %v814_v30 }
  0x23   :  { %456 = vst.msk [vmem:[%s2097_s2 + $0x1e0] sm:$0xff] %vm395_vm0, %v199_v33  ;;  %457 = vst.msk [vmem:[%s2097_s2 + $0x1e8] sm:$0xff] %vm395_vm0, %v200_v34  ;;  %v235_v15 = vadd.f32 %v662_v60, %v690_v0  ;;  %v236_v16 = vadd.f32 %v662_v60, %v698_v2  ;;  %v237_v20 = vadd.f32 %v662_v60, %v705_v5 }
  0x24   :  { %458 = vst.msk [vmem:[%s2097_s2 + $0x1f0] sm:$0xff] %vm395_vm0, %v201_v35  ;;  %459 = vst.msk [vmem:[%s2097_s2 + $0x1f8] sm:$0xff] %vm395_vm0, %v202_v36  ;;  %v238_v21 = vadd.f32 %v662_v60, %v710_v6  ;;  %v239_v22 = vadd.f32 %v662_v60, %v715_v7  ;;  %v240_v26 = vadd.f32 %v662_v60, %v723_v11 }
  0x25   :  { %460 = vst.msk [vmem:[%s2097_s2 + $0x200] sm:$0xff] %vm395_vm0, %v203_v37  ;;  %461 = vst.msk [vmem:[%s2097_s2 + $0x208] sm:$0xff] %vm395_vm0, %v204_v38  ;;  %v241_v28 = vadd.f32 %v662_v60, %v728_v12  ;;  %v242_v31 = vadd.f32 %v662_v60, %v733_v13  ;;  %v243_v32 = vadd.f32 %v662_v60, %v749_v17 }
  0x26   :  { %462 = vst.msk [vmem:[%s2097_s2 + $0x210] sm:$0xff] %vm395_vm0, %v205_v39  ;;  %463 = vst.msk [vmem:[%s2097_s2 + $0x218] sm:$0xff] %vm395_vm0, %v206_v40  ;;  %v244_v33 = vadd.f32 %v662_v60, %v754_v18  ;;  %v245_v34 = vadd.f32 %v662_v60, %v759_v19  ;;  %v246_v35 = vadd.f32 %v662_v60, %v779_v23 }
  0x27   :  { %464 = vst.msk [vmem:[%s2097_s2 + $0x220] sm:$0xff] %vm395_vm0, %v207_v41  ;;  %465 = vst.msk [vmem:[%s2097_s2 + $0x228] sm:$0xff] %vm395_vm0, %v208_v42  ;;  %v247_v36 = vadd.f32 %v662_v60, %v784_v24  ;;  %v248_v37 = vadd.f32 %v662_v60, %v789_v25  ;;  %v249_v38 = vadd.f32 %v662_v60, %v809_v29 }
  0x28   :  { %466 = vst.msk [vmem:[%s2097_s2 + $0x230] sm:$0xff] %vm395_vm0, %v209_v44  ;;  %467 = vst.msk [vmem:[%s2097_s2 + $0x238] sm:$0xff] %vm395_vm0, %v210_v45  ;;  %v250_v39 = vadd.f32 %v662_v60, %v814_v30  ;;  %v251_v40 = vadd.f32 %v663_v27, %v690_v0  ;;  %v252_v41 = vadd.f32 %v663_v27, %v698_v2 }
  0x29   :  { %468 = vst.msk [vmem:[%s2097_s2 + $0x240] sm:$0xff] %vm395_vm0, %v211_v46  ;;  %469 = vst.msk [vmem:[%s2097_s2 + $0x248] sm:$0xff] %vm395_vm0, %v212_v47  ;;  %v253_v42 = vadd.f32 %v663_v27, %v705_v5  ;;  %v254_v43 = vadd.f32 %v663_v27, %v710_v6  ;;  %v255_v44 = vadd.f32 %v663_v27, %v715_v7  ;;  %v664_v46 = vld [vmem:[%s2096_s1 + $0x8] ss:$0 sm:$0xff] }
  0x2a   :  { %470 = vst.msk [vmem:[%s2097_s2 + $0x250] sm:$0xff] %vm395_vm0, %v213_v48  ;;  %471 = vst.msk [vmem:[%s2097_s2 + $0x258] sm:$0xff] %vm395_vm0, %v214_v49  ;;  %v256_v45 = vadd.f32 %v663_v27, %v723_v11  ;;  %v257_v47 = vadd.f32 %v663_v27, %v728_v12  ;;  %v258_v48 = vadd.f32 %v663_v27, %v733_v13 }
  0x2b   :  { %472 = vst.msk [vmem:[%s2097_s2 + $0x260] sm:$0xff] %vm395_vm0, %v215_v50  ;;  %473 = vst.msk [vmem:[%s2097_s2 + $0x268] sm:$0xff] %vm395_vm0, %v216_v51  ;;  %v259_v49 = vadd.f32 %v663_v27, %v749_v17  ;;  %v260_v50 = vadd.f32 %v663_v27, %v754_v18  ;;  %v261_v51 = vadd.f32 %v663_v27, %v759_v19 }
  0x2c   :  { %474 = vst.msk [vmem:[%s2097_s2 + $0x270] sm:$0xff] %vm395_vm0, %v217_v52  ;;  %475 = vst.msk [vmem:[%s2097_s2 + $0x278] sm:$0xff] %vm395_vm0, %v218_v53  ;;  %v262_v52 = vadd.f32 %v663_v27, %v779_v23  ;;  %v263_v53 = vadd.f32 %v663_v27, %v784_v24  ;;  %v270_v60 = vadd.f32 %v664_v46, %v710_v6 }
  0x2d   :  { %476 = vst.msk [vmem:[%s2097_s2 + $0x280] sm:$0xff] %vm395_vm0, %v219_v54  ;;  %477 = vst.msk [vmem:[%s2097_s2 + $0x288] sm:$0xff] %vm395_vm0, %v220_v55  ;;  %v264_v54 = vadd.f32 %v663_v27, %v789_v25  ;;  %v265_v55 = vadd.f32 %v663_v27, %v809_v29 }
  0x2e   :  { %478 = vst.msk [vmem:[%s2097_s2 + $0x290] sm:$0xff] %vm395_vm0, %v221_v56  ;;  %479 = vst.msk [vmem:[%s2097_s2 + $0x298] sm:$0xff] %vm395_vm0, %v222_v57  ;;  %v266_v56 = vadd.f32 %v663_v27, %v814_v30  ;;  %v267_v57 = vadd.f32 %v664_v46, %v690_v0 }
  0x2f   :  { %480 = vst.msk [vmem:[%s2097_s2 + $0x2a0] sm:$0xff] %vm395_vm0, %v223_v58  ;;  %481 = vst.msk [vmem:[%s2097_s2 + $0x2a8] sm:$0xff] %vm395_vm0, %v224_v59  ;;  %v268_v58 = vadd.f32 %v664_v46, %v698_v2  ;;  %v269_v59 = vadd.f32 %v664_v46, %v705_v5 }
  0x30   :  { %482 = vst.msk [vmem:[%s2097_s2 + $0x2b0] sm:$0xff] %vm395_vm0, %v225_v61  ;;  %483 = vst.msk [vmem:[%s2097_s2 + $0x2b8] sm:$0xff] %vm395_vm0, %v226_v62  ;;  %v271_v61 = vadd.f32 %v664_v46, %v715_v7  ;;  %v272_v62 = vadd.f32 %v664_v46, %v723_v11 }
  0x31   :  { %484 = vst.msk [vmem:[%s2097_s2 + $0x2c0] sm:$0xff] %vm395_vm0, %v227_v63  ;;  %485 = vst.msk [vmem:[%s2097_s2 + $0x2c8] sm:$0xff] %vm395_vm0, %v228_v1  ;;  %v665_v63 = vld [vmem:[%s2096_s1 + $0x9] ss:$0 sm:$0xff]  ;;  %v273_v1 = vadd.f32 %v664_v46, %v728_v12 }
  0x32   :  { %486 = vst.msk [vmem:[%s2097_s2 + $0x2d0] sm:$0xff] %vm395_vm0, %v229_v3  ;;  %487 = vst.msk [vmem:[%s2097_s2 + $0x2d8] sm:$0xff] %vm395_vm0, %v230_v4  ;;  %v274_v3 = vadd.f32 %v664_v46, %v733_v13  ;;  %v275_v4 = vadd.f32 %v664_v46, %v749_v17  ;;  %v286_v27 = vadd.f32 %v665_v63, %v710_v6 }
  0x33   :  { %488 = vst.msk [vmem:[%s2097_s2 + $0x2e0] sm:$0xff] %vm395_vm0, %v231_v8  ;;  %489 = vst.msk [vmem:[%s2097_s2 + $0x2e8] sm:$0xff] %vm395_vm0, %v232_v9  ;;  %v276_v8 = vadd.f32 %v664_v46, %v754_v18  ;;  %v277_v9 = vadd.f32 %v664_v46, %v759_v19 }
  0x34   :  { %490 = vst.msk [vmem:[%s2097_s2 + $0x2f0] sm:$0xff] %vm395_vm0, %v233_v10  ;;  %491 = vst.msk [vmem:[%s2097_s2 + $0x2f8] sm:$0xff] %vm395_vm0, %v234_v14  ;;  %v278_v10 = vadd.f32 %v664_v46, %v779_v23  ;;  %v279_v14 = vadd.f32 %v664_v46, %v784_v24 }
  0x35   :  { %492 = vst.msk [vmem:[%s2097_s2 + $0x300] sm:$0xff] %vm395_vm0, %v235_v15  ;;  %493 = vst.msk [vmem:[%s2097_s2 + $0x308] sm:$0xff] %vm395_vm0, %v236_v16  ;;  %v280_v15 = vadd.f32 %v664_v46, %v789_v25  ;;  %v281_v16 = vadd.f32 %v664_v46, %v809_v29 }
  0x36   :  { %494 = vst.msk [vmem:[%s2097_s2 + $0x310] sm:$0xff] %vm395_vm0, %v237_v20  ;;  %495 = vst.msk [vmem:[%s2097_s2 + $0x318] sm:$0xff] %vm395_vm0, %v238_v21  ;;  %v282_v20 = vadd.f32 %v664_v46, %v814_v30  ;;  %v283_v21 = vadd.f32 %v665_v63, %v690_v0 }
  0x37   :  { %496 = vst.msk [vmem:[%s2097_s2 + $0x320] sm:$0xff] %vm395_vm0, %v239_v22  ;;  %497 = vst.msk [vmem:[%s2097_s2 + $0x328] sm:$0xff] %vm395_vm0, %v240_v26  ;;  %v284_v22 = vadd.f32 %v665_v63, %v698_v2  ;;  %v285_v26 = vadd.f32 %v665_v63, %v705_v5 }
  0x38   :  { %498 = vst.msk [vmem:[%s2097_s2 + $0x330] sm:$0xff] %vm395_vm0, %v241_v28  ;;  %499 = vst.msk [vmem:[%s2097_s2 + $0x338] sm:$0xff] %vm395_vm0, %v242_v31  ;;  %v287_v28 = vadd.f32 %v665_v63, %v715_v7  ;;  %v288_v31 = vadd.f32 %v665_v63, %v723_v11 }
  0x39   :  { %500 = vst.msk [vmem:[%s2097_s2 + $0x340] sm:$0xff] %vm395_vm0, %v243_v32  ;;  %501 = vst.msk [vmem:[%s2097_s2 + $0x348] sm:$0xff] %vm395_vm0, %v244_v33  ;;  %v666_v32 = vld [vmem:[%s2096_s1 + $0xa] ss:$0 sm:$0xff]  ;;  %v289_v33 = vadd.f32 %v665_v63, %v728_v12 }
  0x3a   :  { %502 = vst.msk [vmem:[%s2097_s2 + $0x350] sm:$0xff] %vm395_vm0, %v245_v34  ;;  %503 = vst.msk [vmem:[%s2097_s2 + $0x358] sm:$0xff] %vm395_vm0, %v246_v35  ;;  %v290_v34 = vadd.f32 %v665_v63, %v733_v13  ;;  %v291_v35 = vadd.f32 %v665_v63, %v749_v17  ;;  %v302_v46 = vadd.f32 %v666_v32, %v710_v6 }
  0x3b   :  { %504 = vst.msk [vmem:[%s2097_s2 + $0x360] sm:$0xff] %vm395_vm0, %v247_v36  ;;  %505 = vst.msk [vmem:[%s2097_s2 + $0x368] sm:$0xff] %vm395_vm0, %v248_v37  ;;  %v292_v36 = vadd.f32 %v665_v63, %v754_v18  ;;  %v293_v37 = vadd.f32 %v665_v63, %v759_v19 }
  0x3c   :  { %506 = vst.msk [vmem:[%s2097_s2 + $0x370] sm:$0xff] %vm395_vm0, %v249_v38  ;;  %507 = vst.msk [vmem:[%s2097_s2 + $0x378] sm:$0xff] %vm395_vm0, %v250_v39  ;;  %v294_v38 = vadd.f32 %v665_v63, %v779_v23  ;;  %v295_v39 = vadd.f32 %v665_v63, %v784_v24 }
  0x3d   :  { %508 = vst.msk [vmem:[%s2097_s2 + $0x380] sm:$0xff] %vm395_vm0, %v251_v40  ;;  %509 = vst.msk [vmem:[%s2097_s2 + $0x388] sm:$0xff] %vm395_vm0, %v252_v41  ;;  %v296_v40 = vadd.f32 %v665_v63, %v789_v25  ;;  %v297_v41 = vadd.f32 %v665_v63, %v809_v29 }
  0x3e   :  { %510 = vst.msk [vmem:[%s2097_s2 + $0x390] sm:$0xff] %vm395_vm0, %v253_v42  ;;  %511 = vst.msk [vmem:[%s2097_s2 + $0x398] sm:$0xff] %vm395_vm0, %v254_v43  ;;  %v298_v42 = vadd.f32 %v665_v63, %v814_v30  ;;  %v299_v43 = vadd.f32 %v666_v32, %v690_v0 }
  0x3f   :  { %512 = vst.msk [vmem:[%s2097_s2 + $0x3a0] sm:$0xff] %vm395_vm0, %v255_v44  ;;  %513 = vst.msk [vmem:[%s2097_s2 + $0x3a8] sm:$0xff] %vm395_vm0, %v256_v45  ;;  %v300_v44 = vadd.f32 %v666_v32, %v698_v2  ;;  %v301_v45 = vadd.f32 %v666_v32, %v705_v5 }
  0x40   :  { %514 = vst.msk [vmem:[%s2097_s2 + $0x3b0] sm:$0xff] %vm395_vm0, %v257_v47  ;;  %515 = vst.msk [vmem:[%s2097_s2 + $0x3b8] sm:$0xff] %vm395_vm0, %v258_v48  ;;  %v303_v47 = vadd.f32 %v666_v32, %v715_v7  ;;  %v304_v48 = vadd.f32 %v666_v32, %v723_v11 }
  0x41   :  { %516 = vst.msk [vmem:[%s2097_s2 + $0x3c0] sm:$0xff] %vm395_vm0, %v259_v49  ;;  %517 = vst.msk [vmem:[%s2097_s2 + $0x3c8] sm:$0xff] %vm395_vm0, %v260_v50  ;;  %v667_v49 = vld [vmem:[%s2096_s1 + $0xb] ss:$0 sm:$0xff]  ;;  %v305_v50 = vadd.f32 %v666_v32, %v728_v12 }
  0x42   :  { %518 = vst.msk [vmem:[%s2097_s2 + $0x3d0] sm:$0xff] %vm395_vm0, %v261_v51  ;;  %519 = vst.msk [vmem:[%s2097_s2 + $0x3d8] sm:$0xff] %vm395_vm0, %v262_v52  ;;  %v306_v51 = vadd.f32 %v666_v32, %v733_v13  ;;  %v307_v52 = vadd.f32 %v666_v32, %v749_v17  ;;  %v318_v63 = vadd.f32 %v667_v49, %v710_v6 }
  0x43   :  { %520 = vst.msk [vmem:[%s2097_s2 + $0x3e0] sm:$0xff] %vm395_vm0, %v263_v53  ;;  %521 = vst.msk [vmem:[%s2097_s2 + $0x3e8] sm:$0xff] %vm395_vm0, %v264_v54  ;;  %v308_v53 = vadd.f32 %v666_v32, %v754_v18  ;;  %v309_v54 = vadd.f32 %v666_v32, %v759_v19 }
  0x44   :  { %522 = vst.msk [vmem:[%s2097_s2 + $0x3f0] sm:$0xff] %vm395_vm0, %v265_v55  ;;  %523 = vst.msk [vmem:[%s2097_s2 + $0x3f8] sm:$0xff] %vm395_vm0, %v266_v56  ;;  %v310_v55 = vadd.f32 %v666_v32, %v779_v23  ;;  %v311_v56 = vadd.f32 %v666_v32, %v784_v24 }
  0x45   :  { %524 = vst.msk [vmem:[%s2097_s2 + $0x400] sm:$0xff] %vm395_vm0, %v267_v57  ;;  %525 = vst.msk [vmem:[%s2097_s2 + $0x408] sm:$0xff] %vm395_vm0, %v268_v58  ;;  %v312_v57 = vadd.f32 %v666_v32, %v789_v25  ;;  %v313_v58 = vadd.f32 %v666_v32, %v809_v29 }
  0x46   :  { %526 = vst.msk [vmem:[%s2097_s2 + $0x410] sm:$0xff] %vm395_vm0, %v269_v59  ;;  %527 = vst.msk [vmem:[%s2097_s2 + $0x418] sm:$0xff] %vm395_vm0, %v270_v60  ;;  %v314_v59 = vadd.f32 %v666_v32, %v814_v30  ;;  %v315_v60 = vadd.f32 %v667_v49, %v690_v0 }
  0x47   :  { %528 = vst.msk [vmem:[%s2097_s2 + $0x420] sm:$0xff] %vm395_vm0, %v271_v61  ;;  %529 = vst.msk [vmem:[%s2097_s2 + $0x428] sm:$0xff] %vm395_vm0, %v272_v62  ;;  %v316_v61 = vadd.f32 %v667_v49, %v698_v2  ;;  %v317_v62 = vadd.f32 %v667_v49, %v705_v5 }
  0x48   :  { %530 = vst.msk [vmem:[%s2097_s2 + $0x430] sm:$0xff] %vm395_vm0, %v273_v1  ;;  %531 = vst.msk [vmem:[%s2097_s2 + $0x438] sm:$0xff] %vm395_vm0, %v274_v3  ;;  %v319_v1 = vadd.f32 %v667_v49, %v715_v7  ;;  %v320_v3 = vadd.f32 %v667_v49, %v723_v11 }
  0x49   :  { %532 = vst.msk [vmem:[%s2097_s2 + $0x440] sm:$0xff] %vm395_vm0, %v275_v4  ;;  %533 = vst.msk [vmem:[%s2097_s2 + $0x448] sm:$0xff] %vm395_vm0, %v276_v8  ;;  %v668_v4 = vld [vmem:[%s2096_s1 + $0xc] ss:$0 sm:$0xff]  ;;  %v321_v8 = vadd.f32 %v667_v49, %v728_v12 }
  0x4a   :  { %534 = vst.msk [vmem:[%s2097_s2 + $0x450] sm:$0xff] %vm395_vm0, %v277_v9  ;;  %535 = vst.msk [vmem:[%s2097_s2 + $0x458] sm:$0xff] %vm395_vm0, %v278_v10  ;;  %v322_v9 = vadd.f32 %v667_v49, %v733_v13  ;;  %v323_v10 = vadd.f32 %v667_v49, %v749_v17  ;;  %v334_v32 = vadd.f32 %v668_v4, %v710_v6 }
  0x4b   :  { %536 = vst.msk [vmem:[%s2097_s2 + $0x460] sm:$0xff] %vm395_vm0, %v279_v14  ;;  %537 = vst.msk [vmem:[%s2097_s2 + $0x468] sm:$0xff] %vm395_vm0, %v280_v15  ;;  %v324_v14 = vadd.f32 %v667_v49, %v754_v18  ;;  %v325_v15 = vadd.f32 %v667_v49, %v759_v19 }
  0x4c   :  { %538 = vst.msk [vmem:[%s2097_s2 + $0x470] sm:$0xff] %vm395_vm0, %v281_v16  ;;  %539 = vst.msk [vmem:[%s2097_s2 + $0x478] sm:$0xff] %vm395_vm0, %v282_v20  ;;  %v326_v16 = vadd.f32 %v667_v49, %v779_v23  ;;  %v327_v20 = vadd.f32 %v667_v49, %v784_v24 }
  0x4d   :  { %540 = vst.msk [vmem:[%s2097_s2 + $0x480] sm:$0xff] %vm395_vm0, %v283_v21  ;;  %541 = vst.msk [vmem:[%s2097_s2 + $0x488] sm:$0xff] %vm395_vm0, %v284_v22  ;;  %v328_v21 = vadd.f32 %v667_v49, %v789_v25  ;;  %v329_v22 = vadd.f32 %v667_v49, %v809_v29 }
  0x4e   :  { %542 = vst.msk [vmem:[%s2097_s2 + $0x490] sm:$0xff] %vm395_vm0, %v285_v26  ;;  %543 = vst.msk [vmem:[%s2097_s2 + $0x498] sm:$0xff] %vm395_vm0, %v286_v27  ;;  %v330_v26 = vadd.f32 %v667_v49, %v814_v30  ;;  %v331_v27 = vadd.f32 %v668_v4, %v690_v0 }
  0x4f   :  { %544 = vst.msk [vmem:[%s2097_s2 + $0x4a0] sm:$0xff] %vm395_vm0, %v287_v28  ;;  %545 = vst.msk [vmem:[%s2097_s2 + $0x4a8] sm:$0xff] %vm395_vm0, %v288_v31  ;;  %v332_v28 = vadd.f32 %v668_v4, %v698_v2  ;;  %v333_v31 = vadd.f32 %v668_v4, %v705_v5 }
  0x50   :  { %546 = vst.msk [vmem:[%s2097_s2 + $0x4b0] sm:$0xff] %vm395_vm0, %v289_v33  ;;  %547 = vst.msk [vmem:[%s2097_s2 + $0x4b8] sm:$0xff] %vm395_vm0, %v290_v34  ;;  %v335_v33 = vadd.f32 %v668_v4, %v715_v7  ;;  %v336_v34 = vadd.f32 %v668_v4, %v723_v11 }
  0x51   :  { %548 = vst.msk [vmem:[%s2097_s2 + $0x4c0] sm:$0xff] %vm395_vm0, %v291_v35  ;;  %549 = vst.msk [vmem:[%s2097_s2 + $0x4c8] sm:$0xff] %vm395_vm0, %v292_v36  ;;  %v669_v35 = vld [vmem:[%s2096_s1 + $0xd] ss:$0 sm:$0xff]  ;;  %v337_v36 = vadd.f32 %v668_v4, %v728_v12 }
  0x52   :  { %550 = vst.msk [vmem:[%s2097_s2 + $0x4d0] sm:$0xff] %vm395_vm0, %v293_v37  ;;  %551 = vst.msk [vmem:[%s2097_s2 + $0x4d8] sm:$0xff] %vm395_vm0, %v294_v38  ;;  %v338_v37 = vadd.f32 %v668_v4, %v733_v13  ;;  %v339_v38 = vadd.f32 %v668_v4, %v749_v17  ;;  %v350_v49 = vadd.f32 %v669_v35, %v710_v6 }
  0x53   :  { %552 = vst.msk [vmem:[%s2097_s2 + $0x4e0] sm:$0xff] %vm395_vm0, %v295_v39  ;;  %553 = vst.msk [vmem:[%s2097_s2 + $0x4e8] sm:$0xff] %vm395_vm0, %v296_v40  ;;  %v340_v39 = vadd.f32 %v668_v4, %v754_v18  ;;  %v341_v40 = vadd.f32 %v668_v4, %v759_v19 }
  0x54   :  { %554 = vst.msk [vmem:[%s2097_s2 + $0x4f0] sm:$0xff] %vm395_vm0, %v297_v41  ;;  %555 = vst.msk [vmem:[%s2097_s2 + $0x4f8] sm:$0xff] %vm395_vm0, %v298_v42  ;;  %v342_v41 = vadd.f32 %v668_v4, %v779_v23  ;;  %v343_v42 = vadd.f32 %v668_v4, %v784_v24 }
  0x55   :  { %556 = vst.msk [vmem:[%s2097_s2 + $0x500] sm:$0xff] %vm395_vm0, %v299_v43  ;;  %557 = vst.msk [vmem:[%s2097_s2 + $0x508] sm:$0xff] %vm395_vm0, %v300_v44  ;;  %v344_v43 = vadd.f32 %v668_v4, %v789_v25  ;;  %v345_v44 = vadd.f32 %v668_v4, %v809_v29 }
  0x56   :  { %558 = vst.msk [vmem:[%s2097_s2 + $0x510] sm:$0xff] %vm395_vm0, %v301_v45  ;;  %559 = vst.msk [vmem:[%s2097_s2 + $0x518] sm:$0xff] %vm395_vm0, %v302_v46  ;;  %v346_v45 = vadd.f32 %v668_v4, %v814_v30  ;;  %v347_v46 = vadd.f32 %v669_v35, %v690_v0 }
  0x57   :  { %560 = vst.msk [vmem:[%s2097_s2 + $0x520] sm:$0xff] %vm395_vm0, %v303_v47  ;;  %561 = vst.msk [vmem:[%s2097_s2 + $0x528] sm:$0xff] %vm395_vm0, %v304_v48  ;;  %v348_v47 = vadd.f32 %v669_v35, %v698_v2  ;;  %v349_v48 = vadd.f32 %v669_v35, %v705_v5 }
  0x58   :  { %562 = vst.msk [vmem:[%s2097_s2 + $0x530] sm:$0xff] %vm395_vm0, %v305_v50  ;;  %563 = vst.msk [vmem:[%s2097_s2 + $0x538] sm:$0xff] %vm395_vm0, %v306_v51  ;;  %v351_v50 = vadd.f32 %v669_v35, %v715_v7  ;;  %v352_v51 = vadd.f32 %v669_v35, %v723_v11 }
  0x59   :  { %564 = vst.msk [vmem:[%s2097_s2 + $0x540] sm:$0xff] %vm395_vm0, %v307_v52  ;;  %565 = vst.msk [vmem:[%s2097_s2 + $0x548] sm:$0xff] %vm395_vm0, %v308_v53  ;;  %v670_v52 = vld [vmem:[%s2096_s1 + $0xe] ss:$0 sm:$0xff]  ;;  %v353_v53 = vadd.f32 %v669_v35, %v728_v12 }
  0x5a   :  { %566 = vst.msk [vmem:[%s2097_s2 + $0x550] sm:$0xff] %vm395_vm0, %v309_v54  ;;  %567 = vst.msk [vmem:[%s2097_s2 + $0x558] sm:$0xff] %vm395_vm0, %v310_v55  ;;  %v354_v54 = vadd.f32 %v669_v35, %v733_v13  ;;  %v355_v55 = vadd.f32 %v669_v35, %v749_v17  ;;  %v366_v4 = vadd.f32 %v670_v52, %v710_v6 }
  0x5b   :  { %568 = vst.msk [vmem:[%s2097_s2 + $0x560] sm:$0xff] %vm395_vm0, %v311_v56  ;;  %569 = vst.msk [vmem:[%s2097_s2 + $0x568] sm:$0xff] %vm395_vm0, %v312_v57  ;;  %v356_v56 = vadd.f32 %v669_v35, %v754_v18  ;;  %v357_v57 = vadd.f32 %v669_v35, %v759_v19 }
  0x5c   :  { %570 = vst.msk [vmem:[%s2097_s2 + $0x570] sm:$0xff] %vm395_vm0, %v313_v58  ;;  %571 = vst.msk [vmem:[%s2097_s2 + $0x578] sm:$0xff] %vm395_vm0, %v314_v59  ;;  %v358_v58 = vadd.f32 %v669_v35, %v779_v23  ;;  %v359_v59 = vadd.f32 %v669_v35, %v784_v24 }
  0x5d   :  { %572 = vst.msk [vmem:[%s2097_s2 + $0x580] sm:$0xff] %vm395_vm0, %v315_v60  ;;  %573 = vst.msk [vmem:[%s2097_s2 + $0x588] sm:$0xff] %vm395_vm0, %v316_v61  ;;  %v360_v60 = vadd.f32 %v669_v35, %v789_v25  ;;  %v361_v61 = vadd.f32 %v669_v35, %v809_v29 }
  0x5e   :  { %574 = vst.msk [vmem:[%s2097_s2 + $0x590] sm:$0xff] %vm395_vm0, %v317_v62  ;;  %575 = vst.msk [vmem:[%s2097_s2 + $0x598] sm:$0xff] %vm395_vm0, %v318_v63  ;;  %v362_v62 = vadd.f32 %v669_v35, %v814_v30  ;;  %v363_v63 = vadd.f32 %v670_v52, %v690_v0 }
  0x5f   :  { %576 = vst.msk [vmem:[%s2097_s2 + $0x5a0] sm:$0xff] %vm395_vm0, %v319_v1  ;;  %577 = vst.msk [vmem:[%s2097_s2 + $0x5a8] sm:$0xff] %vm395_vm0, %v320_v3  ;;  %v364_v1 = vadd.f32 %v670_v52, %v698_v2  ;;  %v365_v3 = vadd.f32 %v670_v52, %v705_v5 }
  0x60   :  { %578 = vst.msk [vmem:[%s2097_s2 + $0x5b0] sm:$0xff] %vm395_vm0, %v321_v8  ;;  %579 = vst.msk [vmem:[%s2097_s2 + $0x5b8] sm:$0xff] %vm395_vm0, %v322_v9  ;;  %v367_v8 = vadd.f32 %v670_v52, %v715_v7  ;;  %v368_v9 = vadd.f32 %v670_v52, %v723_v11 }
  0x61   :  { %580 = vst.msk [vmem:[%s2097_s2 + $0x5c0] sm:$0xff] %vm395_vm0, %v323_v10  ;;  %581 = vst.msk [vmem:[%s2097_s2 + $0x5c8] sm:$0xff] %vm395_vm0, %v324_v14  ;;  %v671_v10 = vld [vmem:[%s2096_s1 + $0xf] ss:$0 sm:$0xff]  ;;  %v369_v14 = vadd.f32 %v670_v52, %v728_v12 }
  0x62   :  { %582 = vst.msk [vmem:[%s2097_s2 + $0x5d0] sm:$0xff] %vm395_vm0, %v325_v15  ;;  %583 = vst.msk [vmem:[%s2097_s2 + $0x5d8] sm:$0xff] %vm395_vm0, %v326_v16  ;;  %v370_v15 = vadd.f32 %v670_v52, %v733_v13  ;;  %v371_v16 = vadd.f32 %v670_v52, %v749_v17  ;;  %v384_v35 = vadd.f32 %v671_v10, %v723_v11 }
  0x63   :  { %584 = vst.msk [vmem:[%s2097_s2 + $0x5e0] sm:$0xff] %vm395_vm0, %v327_v20  ;;  %585 = vst.msk [vmem:[%s2097_s2 + $0x5e8] sm:$0xff] %vm395_vm0, %v328_v21  ;;  %v372_v20 = vadd.f32 %v670_v52, %v754_v18  ;;  %v373_v21 = vadd.f32 %v670_v52, %v759_v19  ;;  %v388_v11 = vadd.f32 %v671_v10, %v754_v18 }
  0x64   :  { %586 = vst.msk [vmem:[%s2097_s2 + $0x5f0] sm:$0xff] %vm395_vm0, %v329_v22  ;;  %587 = vst.msk [vmem:[%s2097_s2 + $0x5f8] sm:$0xff] %vm395_vm0, %v330_v26  ;;  %v374_v22 = vadd.f32 %v670_v52, %v779_v23  ;;  %v375_v26 = vadd.f32 %v670_v52, %v784_v24  ;;  %v392_v18 = vadd.f32 %v671_v10, %v789_v25 }
  0x65   :  { %588 = vst.msk [vmem:[%s2097_s2 + $0x600] sm:$0xff] %vm395_vm0, %v331_v27  ;;  %589 = vst.msk [vmem:[%s2097_s2 + $0x608] sm:$0xff] %vm395_vm0, %v332_v28  ;;  %v376_v27 = vadd.f32 %v670_v52, %v789_v25  ;;  %v377_v28 = vadd.f32 %v670_v52, %v809_v29 }
  0x66   :  { %590 = vst.msk [vmem:[%s2097_s2 + $0x610] sm:$0xff] %vm395_vm0, %v333_v31  ;;  %591 = vst.msk [vmem:[%s2097_s2 + $0x618] sm:$0xff] %vm395_vm0, %v334_v32  ;;  %v378_v31 = vadd.f32 %v670_v52, %v814_v30  ;;  %v379_v32 = vadd.f32 %v671_v10, %v690_v0  ;;  %v381_v0 = vadd.f32 %v671_v10, %v705_v5 }
  0x67   :  { %592 = vst.msk [vmem:[%s2097_s2 + $0x620] sm:$0xff] %vm395_vm0, %v335_v33  ;;  %593 = vst.msk [vmem:[%s2097_s2 + $0x628] sm:$0xff] %vm395_vm0, %v336_v34  ;;  %v380_v33 = vadd.f32 %v671_v10, %v698_v2  ;;  %v382_v2 = vadd.f32 %v671_v10, %v710_v6  ;;  %v383_v34 = vadd.f32 %v671_v10, %v715_v7 }
  0x68   :  { %594 = vst.msk [vmem:[%s2097_s2 + $0x630] sm:$0xff] %vm395_vm0, %v337_v36  ;;  %595 = vst.msk [vmem:[%s2097_s2 + $0x638] sm:$0xff] %vm395_vm0, %v338_v37  ;;  %v385_v5 = vadd.f32 %v671_v10, %v728_v12  ;;  %v386_v6 = vadd.f32 %v671_v10, %v733_v13  ;;  %v387_v7 = vadd.f32 %v671_v10, %v749_v17 }
  0x69   :  { %596 = vst.msk [vmem:[%s2097_s2 + $0x640] sm:$0xff] %vm395_vm0, %v339_v38  ;;  %597 = vst.msk [vmem:[%s2097_s2 + $0x648] sm:$0xff] %vm395_vm0, %v340_v39  ;;  %v389_v12 = vadd.f32 %v671_v10, %v759_v19  ;;  %v390_v13 = vadd.f32 %v671_v10, %v779_v23  ;;  %v391_v17 = vadd.f32 %v671_v10, %v784_v24 }
  0x6a   :  { %598 = vst.msk [vmem:[%s2097_s2 + $0x650] sm:$0xff] %vm395_vm0, %v341_v40  ;;  %599 = vst.msk [vmem:[%s2097_s2 + $0x658] sm:$0xff] %vm395_vm0, %v342_v41  ;;  %v393_v19 = vadd.f32 %v671_v10, %v809_v29  ;;  %v394_v23 = vadd.f32 %v671_v10, %v814_v30 }
  0x6b   :  { %600 = vst.msk [vmem:[%s2097_s2 + $0x660] sm:$0xff] %vm395_vm0, %v343_v42  ;;  %601 = vst.msk [vmem:[%s2097_s2 + $0x668] sm:$0xff] %vm395_vm0, %v344_v43 }
  0x6c   :  { %602 = vst.msk [vmem:[%s2097_s2 + $0x670] sm:$0xff] %vm395_vm0, %v345_v44  ;;  %603 = vst.msk [vmem:[%s2097_s2 + $0x678] sm:$0xff] %vm395_vm0, %v346_v45 }
  0x6d   :  { %604 = vst.msk [vmem:[%s2097_s2 + $0x680] sm:$0xff] %vm395_vm0, %v347_v46  ;;  %605 = vst.msk [vmem:[%s2097_s2 + $0x688] sm:$0xff] %vm395_vm0, %v348_v47 }
  0x6e   :  { %606 = vst.msk [vmem:[%s2097_s2 + $0x690] sm:$0xff] %vm395_vm0, %v349_v48  ;;  %607 = vst.msk [vmem:[%s2097_s2 + $0x698] sm:$0xff] %vm395_vm0, %v350_v49 }
  0x6f   :  { %608 = vst.msk [vmem:[%s2097_s2 + $0x6a0] sm:$0xff] %vm395_vm0, %v351_v50  ;;  %609 = vst.msk [vmem:[%s2097_s2 + $0x6a8] sm:$0xff] %vm395_vm0, %v352_v51 }
  0x70   :  { %610 = vst.msk [vmem:[%s2097_s2 + $0x6b0] sm:$0xff] %vm395_vm0, %v353_v53  ;;  %611 = vst.msk [vmem:[%s2097_s2 + $0x6b8] sm:$0xff] %vm395_vm0, %v354_v54 }
  0x71   :  { %612 = vst.msk [vmem:[%s2097_s2 + $0x6c0] sm:$0xff] %vm395_vm0, %v355_v55  ;;  %613 = vst.msk [vmem:[%s2097_s2 + $0x6c8] sm:$0xff] %vm395_vm0, %v356_v56 }
  0x72   :  { %614 = vst.msk [vmem:[%s2097_s2 + $0x6d0] sm:$0xff] %vm395_vm0, %v357_v57  ;;  %615 = vst.msk [vmem:[%s2097_s2 + $0x6d8] sm:$0xff] %vm395_vm0, %v358_v58 }
  0x73   :  { %616 = vst.msk [vmem:[%s2097_s2 + $0x6e0] sm:$0xff] %vm395_vm0, %v359_v59  ;;  %617 = vst.msk [vmem:[%s2097_s2 + $0x6e8] sm:$0xff] %vm395_vm0, %v360_v60 }
  0x74   :  { %618 = vst.msk [vmem:[%s2097_s2 + $0x6f0] sm:$0xff] %vm395_vm0, %v361_v61  ;;  %619 = vst.msk [vmem:[%s2097_s2 + $0x6f8] sm:$0xff] %vm395_vm0, %v362_v62 }
  0x75   :  { %620 = vst.msk [vmem:[%s2097_s2 + $0x700] sm:$0xff] %vm395_vm0, %v363_v63  ;;  %621 = vst.msk [vmem:[%s2097_s2 + $0x708] sm:$0xff] %vm395_vm0, %v364_v1 }
  0x76   :  { %622 = vst.msk [vmem:[%s2097_s2 + $0x710] sm:$0xff] %vm395_vm0, %v365_v3  ;;  %623 = vst.msk [vmem:[%s2097_s2 + $0x718] sm:$0xff] %vm395_vm0, %v366_v4 }
  0x77   :  { %624 = vst.msk [vmem:[%s2097_s2 + $0x720] sm:$0xff] %vm395_vm0, %v367_v8  ;;  %625 = vst.msk [vmem:[%s2097_s2 + $0x728] sm:$0xff] %vm395_vm0, %v368_v9 }
  0x78   :  { %626 = vst.msk [vmem:[%s2097_s2 + $0x730] sm:$0xff] %vm395_vm0, %v369_v14  ;;  %627 = vst.msk [vmem:[%s2097_s2 + $0x738] sm:$0xff] %vm395_vm0, %v370_v15 }
  0x79   :  { %628 = vst.msk [vmem:[%s2097_s2 + $0x740] sm:$0xff] %vm395_vm0, %v371_v16  ;;  %629 = vst.msk [vmem:[%s2097_s2 + $0x748] sm:$0xff] %vm395_vm0, %v372_v20 }
  0x7a   :  { %630 = vst.msk [vmem:[%s2097_s2 + $0x750] sm:$0xff] %vm395_vm0, %v373_v21  ;;  %631 = vst.msk [vmem:[%s2097_s2 + $0x758] sm:$0xff] %vm395_vm0, %v374_v22 }
  0x7b   :  { %632 = vst.msk [vmem:[%s2097_s2 + $0x760] sm:$0xff] %vm395_vm0, %v375_v26  ;;  %633 = vst.msk [vmem:[%s2097_s2 + $0x768] sm:$0xff] %vm395_vm0, %v376_v27 }
  0x7c   :  { %634 = vst.msk [vmem:[%s2097_s2 + $0x770] sm:$0xff] %vm395_vm0, %v377_v28  ;;  %635 = vst.msk [vmem:[%s2097_s2 + $0x778] sm:$0xff] %vm395_vm0, %v378_v31 }
  0x7d   :  { %636 = vst.msk [vmem:[%s2097_s2 + $0x780] sm:$0xff] %vm395_vm0, %v379_v32  ;;  %637 = vst.msk [vmem:[%s2097_s2 + $0x788] sm:$0xff] %vm395_vm0, %v380_v33 }
  0x7e   :  { %638 = vst.msk [vmem:[%s2097_s2 + $0x790] sm:$0xff] %vm395_vm0, %v381_v0  ;;  %639 = vst.msk [vmem:[%s2097_s2 + $0x798] sm:$0xff] %vm395_vm0, %v382_v2 }
  0x7f   :  { %640 = vst.msk [vmem:[%s2097_s2 + $0x7a0] sm:$0xff] %vm395_vm0, %v383_v34  ;;  %641 = vst.msk [vmem:[%s2097_s2 + $0x7a8] sm:$0xff] %vm395_vm0, %v384_v35 }
  0x80   :  { %642 = vst.msk [vmem:[%s2097_s2 + $0x7b0] sm:$0xff] %vm395_vm0, %v385_v5  ;;  %643 = vst.msk [vmem:[%s2097_s2 + $0x7b8] sm:$0xff] %vm395_vm0, %v386_v6 }
  0x81   :  { %644 = vst.msk [vmem:[%s2097_s2 + $0x7c0] sm:$0xff] %vm395_vm0, %v387_v7  ;;  %645 = vst.msk [vmem:[%s2097_s2 + $0x7c8] sm:$0xff] %vm395_vm0, %v388_v11 }
  0x82   :  { %646 = vst.msk [vmem:[%s2097_s2 + $0x7d0] sm:$0xff] %vm395_vm0, %v389_v12  ;;  %647 = vst.msk [vmem:[%s2097_s2 + $0x7d8] sm:$0xff] %vm395_vm0, %v390_v13 }
  0x83   :  { %648 = vst.msk [vmem:[%s2097_s2 + $0x7e0] sm:$0xff] %vm395_vm0, %v391_v17  ;;  %649 = vst.msk [vmem:[%s2097_s2 + $0x7e8] sm:$0xff] %vm395_vm0, %v392_v18 }
  0x84   :  { %650 = vst.msk [vmem:[%s2097_s2 + $0x7f0] sm:$0xff] %vm395_vm0, %v393_v19  ;;  %651 = vst.msk [vmem:[%s2097_s2 + $0x7f8] sm:$0xff] %vm395_vm0, %v394_v23 }

</bundles_post_ra>
